<compile_context>
chip_gen: v7x
topology: tpu7x:2x2x1
jax: 0.10.0
libtpu: 0.0.40
codegen_flags: <defaults>
</compile_context>

<pallas_src>
import math

import jax
import jax.numpy as jnp
from jax.experimental import pallas as pl
from jax.experimental.pallas import tpu as pltpu


def _round_up(x, m):
    return ((x + m - 1) // m) * m


# ----------------------------------------------------------------------------
# Stage 1: per-node payload from h = x @ W.
#   payload columns (each r_pad lanes, bf16):
#     [0r:1r) log|h| high part   [1r:2r) mid part   [2r:3r) low part
#     [3r:4r) 1.0 where h < 0    [4r:5r) 1.0 where h == 0
#   hi+mid+lo reconstruct log|h| to ~2^-26 relative, so the adjacency matmul
#   (exact 0/1 bf16 LHS) yields an ~f32-accurate log-sum from pure bf16 MXU ops.
# ----------------------------------------------------------------------------
def _payload_kernel(x_ref, w_ref, pay_ref):
    r = w_ref.shape[1]
    h = jnp.dot(x_ref[...], w_ref[...], preferred_element_type=jnp.float32)
    zflag = jnp.where(h == 0.0, 1.0, 0.0)          # exact-zero factors
    nflag = jnp.where(h < 0.0, 1.0, 0.0)           # negative factors
    logabs = jnp.log(jnp.abs(h) + zflag)           # log|h|; 0 where h == 0

    hi = logabs.astype(jnp.bfloat16)
    r1 = logabs - hi.astype(jnp.float32)
    mid = r1.astype(jnp.bfloat16)
    lo = (r1 - mid.astype(jnp.float32)).astype(jnp.bfloat16)

    pay_ref[:, 0 * r:1 * r] = hi
    pay_ref[:, 1 * r:2 * r] = mid
    pay_ref[:, 2 * r:3 * r] = lo
    pay_ref[:, 3 * r:4 * r] = nflag.astype(jnp.bfloat16)
    pay_ref[:, 4 * r:5 * r] = zflag.astype(jnp.bfloat16)


# ----------------------------------------------------------------------------
# Stage 2: log-domain product aggregation (MXU) + V^T projection.
#   grid = (dst_tiles, src_tiles), reduction (src) axis last.
#   acc_ref : (tm, 5*r_pad) f32 running sums of [log-hi, log-mid, log-lo,
#             neg-count, zero-count] over sources seen so far.
#   deg_ref : (tm, 1) running in-degree (DGL zero-fills isolated nodes).
# ----------------------------------------------------------------------------
def _make_agg_kernel(tk, r_pad, nk, resident_payload):
    def kernel(cnt_ref, adj_ref, pay_ref, vt_ref, out_ref, acc_ref, deg_ref):
        i = pl.program_id(0)
        k = pl.program_id(1)

        @pl.when(k == 0)
        def _init():
            acc_ref[...] = jnp.zeros(acc_ref.shape, acc_ref.dtype)
            deg_ref[...] = jnp.zeros(deg_ref.shape, deg_ref.dtype)

        # Block-sparse skip: all-zero adjacency tiles contribute nothing
        # (accumulator init is 0 -> skipping is exact).
        @pl.when(cnt_ref[i * nk + k] > 0)
        def _accumulate():
            a = adj_ref[...]                                  # (tm, tk) 0/1 bf16
            if resident_payload:
                row0 = pl.multiple_of(k * tk, tk)
                pay = pay_ref[pl.ds(row0, tk), :]             # (tk, 5*r_pad)
            else:
                pay = pay_ref[...]                            # (tk, 5*r_pad)
            acc_ref[...] += jnp.dot(a, pay, preferred_element_type=jnp.float32)
            deg_ref[...] += jnp.sum(a.astype(jnp.float32), axis=1, keepdims=True)

        @pl.when(k == pl.num_programs(1) - 1)
        def _finalize():
            acc = acc_ref[...]
            logsum = (acc[:, 0 * r_pad:1 * r_pad]
                      + acc[:, 1 * r_pad:2 * r_pad]
                      + acc[:, 2 * r_pad:3 * r_pad])
            negcnt = acc[:, 3 * r_pad:4 * r_pad]              # exact int in f32
            zerocnt = acc[:, 4 * r_pad:5 * r_pad]             # exact int in f32

            half = negcnt * 0.5
            parity = half - jnp.floor(half)                   # exactly 0.0 / 0.5
            sign = 1.0 - 4.0 * parity                         # +1 / -1

            neigh = sign * jnp.exp(logsum)                    # EUP
            neigh = jnp.where(zerocnt > 0.0, 0.0, neigh)      # any zero factor
            neigh = jnp.where(deg_ref[...] > 0.0, neigh, 0.0)  # zero in-degree
            out_ref[...] = jnp.dot(neigh, vt_ref[...],
                                   preferred_element_type=jnp.float32)

    return kernel


def cplayer_forward(adj, x, W, V, *, resident_payload=None):
    """CPlayer forward (non-tuple path): (prod-aggregate(adj, x @ W)) @ V.T.

    adj: (N, N)       dense adjacency, adj[dst, src] != 0 iff edge src->dst
    x:   (N, in_fea)  node features
    W:   (in_fea, rank)
    V:   (hidden, rank)
    returns (N, hidden) float32
    """
    N, in_fea = x.shape
    rank = W.shape[1]
    hidden = V.shape[0]

    lane = 128
    tk = 128
    n_pad = _round_up(N, tk)
    # Larger dst tile for big graphs (amortizes per-step overhead, cuts payload
    # re-stream); keep 128 for small graphs so the parallel dst axis keeps
    # multiple tiles (megacore / v7x dual-TC sharding).
    tm = 256 if (n_pad >= 1024 and n_pad % 256 == 0) else 128

    f_pad = _round_up(in_fea, lane)
    r_pad = _round_up(rank, lane)
    h_pad = _round_up(hidden, lane)
    pw = 5 * r_pad

    # Lane-dense, zero-padded operands.  Adjacency is binarised (adj > 0,
    # matching the reference / DGL presence semantics) and streamed as bf16
    # (0/1 exact); padding rows/cols are zero so they never contribute.
    x_p = jnp.zeros((n_pad, f_pad), jnp.float32).at[:N, :in_fea].set(
        x.astype(jnp.float32))
    w_p = jnp.zeros((f_pad, r_pad), jnp.float32).at[:in_fea, :rank].set(
        W.astype(jnp.float32))
    vt_p = jnp.zeros((r_pad, h_pad), jnp.float32).at[:rank, :hidden].set(
        V.T.astype(jnp.float32))
    adj_p = jnp.zeros((n_pad, n_pad), jnp.bfloat16).at[:N, :N].set(
        (adj > 0).astype(jnp.bfloat16))

    # --- Stage 1: payload = f(x @ W) ------------------------------------------
    tmx = 128
    pay = pl.pallas_call(
        _payload_kernel,
        out_shape=jax.ShapeDtypeStruct((n_pad, pw), jnp.bfloat16),
        grid_spec=pltpu.PrefetchScalarGridSpec(
            num_scalar_prefetch=0,
            grid=(n_pad // tmx,),
            in_specs=[
                pl.BlockSpec((tmx, f_pad), lambda i: (i, 0)),
                pl.BlockSpec((f_pad, r_pad), lambda i: (0, 0)),
            ],
            out_specs=pl.BlockSpec((tmx, pw), lambda i: (i, 0)),
        ),
        compiler_params=pltpu.CompilerParams(
            dimension_semantics=("parallel",),
        ),
        cost_estimate=pl.CostEstimate(
            flops=2 * n_pad * f_pad * r_pad,
            transcendentals=n_pad * r_pad,
            bytes_accessed=4 * (n_pad * f_pad + f_pad * r_pad) + 2 * n_pad * pw,
        ),
    )(x_p, w_p)

    nm, nk = n_pad // tm, n_pad // tk

    # Per-(dst_tile, src_tile) occupancy for block-sparse skipping (SMEM).
    blk_nonzero = (adj_p.reshape(nm, tm, nk, tk) != 0).any(axis=(1, 3))
    blk_nonzero = blk_nonzero.astype(jnp.int32).reshape(nm * nk)

    # Keep the payload fully VMEM-resident when it fits a conservative budget
    # (2x for pipeline buffers), else stream it per src tile.
    if resident_payload is None:
        resident_payload = (n_pad * pw * 2) <= (8 * 1024 * 1024)

    if resident_payload:
        pay_spec = pl.BlockSpec((n_pad, pw), lambda i, k, c: (0, 0))
        pay_blk_rows = n_pad
    else:
        pay_spec = pl.BlockSpec((tk, pw), lambda i, k, c: (k, 0))
        pay_blk_rows = tk

    vmem_need = (tm * pw * 4                 # acc scratch
                 + tm * 128 * 4              # deg scratch (padded)
                 + 2 * tm * tk * 2           # adj tiles (double-buffered, bf16)
                 + 2 * pay_blk_rows * pw * 2  # payload block(s), bf16
                 + 2 * r_pad * h_pad * 4     # V^T
                 + 2 * tm * h_pad * 4)       # out tile
    vmem_limit = int(min(max(2 * vmem_need, 24 * 1024 * 1024),
                         48 * 1024 * 1024))

    pay_bytes = (n_pad * pw * 2 if resident_payload
                 else nm * n_pad * pw * 2)

    # --- Stage 2: log-domain aggregation + projection --------------------------
    out_p = pl.pallas_call(
        _make_agg_kernel(tk, r_pad, nk, resident_payload),
        out_shape=jax.ShapeDtypeStruct((n_pad, h_pad), jnp.float32),
        grid_spec=pltpu.PrefetchScalarGridSpec(
            num_scalar_prefetch=1,
            grid=(nm, nk),
            in_specs=[
                pl.BlockSpec((tm, tk), lambda i, k, c: (i, k)),       # adj tile
                pay_spec,                                             # payload
                pl.BlockSpec((r_pad, h_pad), lambda i, k, c: (0, 0)),  # V^T
            ],
            out_specs=pl.BlockSpec((tm, h_pad), lambda i, k, c: (i, 0)),
            scratch_shapes=[
                pltpu.VMEM((tm, pw), jnp.float32),   # log/neg/zero accumulators
                pltpu.VMEM((tm, 1), jnp.float32),    # in-degree accumulator
            ],
        ),
        compiler_params=pltpu.CompilerParams(
            dimension_semantics=("parallel", "arbitrary"),
            vmem_limit_bytes=vmem_limit,
        ),
        cost_estimate=pl.CostEstimate(
            flops=2 * n_pad * n_pad * pw + 2 * n_pad * r_pad * h_pad,
            transcendentals=n_pad * r_pad,
            bytes_accessed=(2 * n_pad * n_pad + pay_bytes
                            + 4 * (r_pad * h_pad + n_pad * h_pad)),
        ),
    )(blk_nonzero, adj_p, pay, vt_p)

    return out_p[:N, :hidden]


def xavier_uniform(key, shape, dtype=jnp.float32):
    fan_in, fan_out = shape
    bound = math.sqrt(6.0 / (fan_in + fan_out))
    return jax.random.uniform(key, shape, dtype, minval=-bound, maxval=bound)


def _reference(adj, x, W, V):
    h = x @ W
    factors = jnp.where(adj[:, :, None] > 0, h[None, :, :], 1.0)
    neigh = jnp.prod(factors, axis=1)
    deg = jnp.sum(adj, axis=1, keepdims=True)
    neigh = jnp.where(deg > 0, neigh, 0.0)
    return neigh @ V.T


if __name__ == "__main__":
    key = jax.random.PRNGKey(0)
    k_w, k_v, k_x, k_a, k_w2, k_v2, k_x2, k_a2 = jax.random.split(key, 8)

    # --- Test 1: small graph with self loops (single-tile grid, resident path)
    N, in_fea, hidden, rank = 16, 8, 32, 16
    W = xavier_uniform(k_w, (in_fea, rank))
    V = xavier_uniform(k_v, (hidden, rank))
    x = jax.random.normal(k_x, (N, in_fea), dtype=jnp.float32)
    adj = (jax.random.uniform(k_a, (N, N)) < 0.25).astype(jnp.float32)
    adj = jnp.maximum(adj, jnp.eye(N, dtype=jnp.float32))

    out = cplayer_forward(adj, x, W, V)
    jax.block_until_ready(out)
    ref = _reference(adj, x, W, V)
    assert out.shape == (N, hidden)
    err = float(jnp.max(jnp.abs(out - ref)))
    assert jnp.allclose(out, ref, atol=1e-4, rtol=1e-4), err

    # --- Test 2: multi-tile grid, zero-in-degree nodes, a weighted edge,
    #             non-multiple-of-128 dims, streamed-payload + block-skip path.
    N2, in_fea2, hidden2, rank2 = 200, 10, 48, 24
    W2 = xavier_uniform(k_w2, (in_fea2, rank2))
    V2 = xavier_uniform(k_v2, (hidden2, rank2))
    x2 = jax.random.normal(k_x2, (N2, in_fea2), dtype=jnp.float32)
    adj2 = (jax.random.uniform(k_a2, (N2, N2)) < 0.12).astype(jnp.float32)
    keep = (jnp.arange(N2) < 96).astype(jnp.float32)
    adj2 = adj2 * keep[None, :] * keep[:, None]     # nodes >= 96 are isolated
    adj2 = adj2.at[3, 150].set(2.0)                 # weighted edge, 2nd src tile

    out2 = cplayer_forward(adj2, x2, W2, V2, resident_payload=False)
    jax.block_until_ready(out2)
    ref2 = _reference(adj2, x2, W2, V2)
    assert out2.shape == (N2, hidden2)
    err2 = float(jnp.max(jnp.abs(out2 - ref2)))
    assert jnp.allclose(out2, ref2, atol=1e-4, rtol=1e-4), err2

    print("KERNEL_OK")
</pallas_src>

<mosaic_0001>
module attributes {stable_mosaic.version = 11 : i64} {
  func.func @_payload_kernel(%arg0: i32, %arg1: memref<128x128xf32, #tpu.memory_space<vmem>>, %arg2: memref<128x128xf32, #tpu.memory_space<vmem>>, %arg3: memref<128x640xbf16, #tpu.memory_space<vmem>>) attributes {dimension_semantics = [#tpu.dimension_semantics<parallel>], iteration_bounds = array<i64: 1>, scalar_prefetch = 0 : i64, scratch_operands = 0 : i64, tpu.core_type = #tpu.core_type<tc>, window_params = [{transform_indices = @transform_0, window_bounds = array<i64: 128, 128>}, {pipeline_mode = #tpu.pipeline_mode<synchronous>, transform_indices = @transform_1, window_bounds = array<i64: 128, 128>}, {transform_indices = @transform_2, window_bounds = array<i64: 128, 640>}]} {
    %c0 = arith.constant 0 : index
    %c0_0 = arith.constant 0 : index
    %0 = vector.load %arg1[%c0, %c0_0] : memref<128x128xf32, #tpu.memory_space<vmem>>, vector<128x128xf32>
    %c0_1 = arith.constant 0 : index
    %c0_2 = arith.constant 0 : index
    %1 = vector.load %arg2[%c0_1, %c0_2] : memref<128x128xf32, #tpu.memory_space<vmem>>, vector<128x128xf32>
    %cst = arith.constant dense<0.000000e+00> : vector<128x128xf32>
    %2 = tpu.matmul %0, %1, %cst {dimension_numbers = #tpu.dot_dimension_numbers<[1], [0], [0], [1], [0, 0, 1, 1], [], []>} : vector<128x128xf32>, vector<128x128xf32>, vector<128x128xf32> -> vector<128x128xf32>
    %cst_3 = arith.constant 0.000000e+00 : f32
    %3 = vector.broadcast %cst_3 : f32 to vector<128x128xf32>
    %4 = arith.cmpf oeq, %2, %3 : vector<128x128xf32>
    %cst_4 = arith.constant 1.000000e+00 : f32
    %cst_5 = arith.constant 0.000000e+00 : f32
    %5 = vector.broadcast %cst_4 : f32 to vector<128x128xf32>
    %6 = vector.broadcast %cst_5 : f32 to vector<128x128xf32>
    %7 = arith.select %4, %5, %6 : vector<128x128xi1>, vector<128x128xf32>
    %cst_6 = arith.constant 0.000000e+00 : f32
    %8 = vector.broadcast %cst_6 : f32 to vector<128x128xf32>
    %9 = arith.cmpf olt, %2, %8 : vector<128x128xf32>
    %cst_7 = arith.constant 1.000000e+00 : f32
    %cst_8 = arith.constant 0.000000e+00 : f32
    %10 = vector.broadcast %cst_7 : f32 to vector<128x128xf32>
    %11 = vector.broadcast %cst_8 : f32 to vector<128x128xf32>
    %12 = arith.select %9, %10, %11 : vector<128x128xi1>, vector<128x128xf32>
    %13 = math.absf %2 : vector<128x128xf32>
    %14 = arith.addf %13, %7 : vector<128x128xf32>
    %15 = math.log %14 : vector<128x128xf32>
    %16 = arith.truncf %15 : vector<128x128xf32> to vector<128x128xbf16>
    %17 = arith.extf %16 : vector<128x128xbf16> to vector<128x128xf32>
    %18 = arith.subf %15, %17 : vector<128x128xf32>
    %19 = arith.truncf %18 : vector<128x128xf32> to vector<128x128xbf16>
    %20 = arith.extf %19 : vector<128x128xbf16> to vector<128x128xf32>
    %21 = arith.subf %18, %20 : vector<128x128xf32>
    %22 = arith.truncf %21 : vector<128x128xf32> to vector<128x128xbf16>
    %c0_9 = arith.constant 0 : index
    %c0_10 = arith.constant 0 : index
    %23 = vector.load %arg3[%c0_9, %c0_10] : memref<128x640xbf16, #tpu.memory_space<vmem>>, vector<128x128xbf16>
    tpu.vector_store %arg3[%c0_9, %c0_10], %16 {strides = array<i32>} : memref<128x640xbf16, #tpu.memory_space<vmem>>, vector<128x128xbf16>,
    %c0_11 = arith.constant 0 : index
    %c128 = arith.constant 128 : index
    %24 = vector.load %arg3[%c0_11, %c128] : memref<128x640xbf16, #tpu.memory_space<vmem>>, vector<128x128xbf16>
    tpu.vector_store %arg3[%c0_11, %c128], %19 {strides = array<i32>} : memref<128x640xbf16, #tpu.memory_space<vmem>>, vector<128x128xbf16>,
    %c0_12 = arith.constant 0 : index
    %c256 = arith.constant 256 : index
    %25 = vector.load %arg3[%c0_12, %c256] : memref<128x640xbf16, #tpu.memory_space<vmem>>, vector<128x128xbf16>
    tpu.vector_store %arg3[%c0_12, %c256], %22 {strides = array<i32>} : memref<128x640xbf16, #tpu.memory_space<vmem>>, vector<128x128xbf16>,
    %26 = arith.truncf %12 : vector<128x128xf32> to vector<128x128xbf16>
    %c0_13 = arith.constant 0 : index
    %c384 = arith.constant 384 : index
    %27 = vector.load %arg3[%c0_13, %c384] : memref<128x640xbf16, #tpu.memory_space<vmem>>, vector<128x128xbf16>
    tpu.vector_store %arg3[%c0_13, %c384], %26 {strides = array<i32>} : memref<128x640xbf16, #tpu.memory_space<vmem>>, vector<128x128xbf16>,
    %28 = arith.truncf %7 : vector<128x128xf32> to vector<128x128xbf16>
    %c0_14 = arith.constant 0 : index
    %c512 = arith.constant 512 : index
    %29 = vector.load %arg3[%c0_14, %c512] : memref<128x640xbf16, #tpu.memory_space<vmem>>, vector<128x128xbf16>
    tpu.vector_store %arg3[%c0_14, %c512], %28 {strides = array<i32>} : memref<128x640xbf16, #tpu.memory_space<vmem>>, vector<128x128xbf16>,
    return
  }
  func.func @transform_0(%arg0: i32) -> (i32, i32) {
    %c0_i32 = arith.constant 0 : i32
    %c0_i32_0 = arith.constant 0 : i32
    return %arg0, %c0_i32 : i32, i32
  }
  func.func @transform_1(%arg0: i32) -> (i32, i32) {
    %c0_i32 = arith.constant 0 : i32
    %c0_i32_0 = arith.constant 0 : i32
    %c0_i32_1 = arith.constant 0 : i32
    return %c0_i32, %c0_i32_0 : i32, i32
  }
  func.func @transform_2(%arg0: i32) -> (i32, i32) {
    %c0_i32 = arith.constant 0 : i32
    %c0_i32_0 = arith.constant 0 : i32
    return %arg0, %c0_i32 : i32, i32
  }
}

</mosaic_0001>

<bundles_post_ra>
// kernel: tpu_custom_call.1
= control target key start
LH: loop header
LB: loop body
LE: loop exit
PB: predicated region body
PF: predicated region fallthrough
CT: control target
= control target key end

     0   :  { %7 = vsyncpa [#allocation3], 0  ;;  %s1400_s0 = inlined_call_operand.hbm [shape: f32[128,128], index: 0, kind: input, shape index: {}]   ;;  %s1401_s1 = inlined_call_operand.hbm [shape: f32[128,128], index: 1, kind: input, shape index: {}]   ;;  %s1402_s2 = inlined_call_operand.hbm [shape: bf16[128,640], index: 2, kind: output, shape index: {}]  }
   0x1   :  { %8 = vsyncpa [#allocation6], 0 }
   0x2   :  { %9 = vsyncpa [#allocation4], 0  ;;  %s1235_s9 = smov [#allocation2]   ;;  %s1163_s13 = scalar_lea.hbm %s1400_s0, 2048 }
   0x3   :  { %s15_s10 = sshll.u32 %s1235_s9, 4  ;;  %p1164_p0 = scmp.ne.s32.totalorder %s1400_s0, %s1163_s13  ;;  %s16_s10 = int_to_ptr.vmem [resolvable:$true] %s15_s10 }
   0x4   :  { %p1167_p1 = scmp.lt.u32.totalorder %s1163_s13, %s1400_s0 }
   0x6   :  { %p1169_p2 = pnand %p1167_p1, %p1164_p0 }
   0x8   :  { %1172 = shalt.err (!%p1169_p2)
}
   0x9   :  { %s1173_s18 = scalar_lea.vmem %s16_s10, 2048  ;;  %p1178_p4 = scmp.lt.s32.totalorder %s16_s10, %s16_s10 }
   0xa   :  { %p1174_p3 = scmp.ne.s32.totalorder %s16_s10, %s1173_s18  ;;  %p1179_p5 = scmp.lt.s32.totalorder %s1173_s18, %s1173_s18 }
   0xc   :  { %p1180_p6 = por %p1179_p5, %p1178_p4 }
   0xe   :  { %p1181_p7 = pnand %p1180_p6, %p1174_p3 }
  0x10   :  { %1184 = shalt.err (!%p1181_p7)
}
  0x11   :  { %s1236_s19 = smov 128   ;;  %s1237_s20 = smov 8  }
  0x12   :  { %21 = dma.hbm_to_vmem [thread:$0]  %s1400_s0, 2048, %s16_s10, [#allocation3], %s1236_s19, %s1236_s19, %s1237_s20  }
  0x13   :  { %s1238_s23 = smov [#allocation5]   ;;  %s1185_s27 = scalar_lea.hbm %s1401_s1, 2048 }
  0x14   :  { %s27_s24 = sshll.u32 %s1238_s23, 4  ;;  %p1186_p8 = scmp.ne.s32.totalorder %s1401_s1, %s1185_s27  ;;  %s28_s24 = int_to_ptr.vmem [resolvable:$true] %s27_s24 }
  0x15   :  { %p1189_p9 = scmp.lt.u32.totalorder %s1185_s27, %s1401_s1 }
  0x17   :  { %p1191_p10 = pnand %p1189_p9, %p1186_p8 }
  0x19   :  { %1194 = shalt.err (!%p1191_p10)
}
  0x1a   :  { %s1195_s4 = scalar_lea.vmem %s28_s24, 2048  ;;  %p1200_p12 = scmp.lt.s32.totalorder %s28_s24, %s28_s24 }
  0x1b   :  { %p1196_p11 = scmp.ne.s32.totalorder %s28_s24, %s1195_s4  ;;  %p1201_p13 = scmp.lt.s32.totalorder %s1195_s4, %s1195_s4 }
  0x1d   :  { %p1202_p0 = por %p1201_p13, %p1200_p12 }
  0x1f   :  { %p1203_p1 = pnand %p1202_p0, %p1196_p11 }
  0x21   :  { %1206 = shalt.err (!%p1203_p1)
}
  0x22   :  { %33 = dma.hbm_to_vmem [thread:$0]  %s1401_s1, 2048, %s28_s24, [#allocation6], %s1236_s19, %s1236_s19, %s1237_s20  }
  0x23   :  { %1229 = dma.done.wait [#allocation3], 2048  }
  0x24   :  { %1230 = vsyncadd [#allocation3], 4294965248 }
  0x25   :  { %1231 = dma.done.wait [#allocation6], 2048  }
  0x26   :  { %1232 = vsyncadd [#allocation6], 4294965248  ;;  %v56_v0 = vld [vmem:[#allocation5] sm:$0xff]  ;;  %v57_v1 = vld [vmem:[#allocation5 + $0x8] sm:$0xff]  ;;  %v1239_v44 = vmov 0.0   ;;  %s1240_s1 = smov [#allocation7]  }
  0x27   :  { %v58_v2 = vld [vmem:[#allocation5 + $0x10] sm:$0xff]  ;;  %v1075_v3 = vpack.c.bf16 %v57_v1, %v56_v0  ;;  %v59_v4 = vld [vmem:[#allocation5 + $0x18] sm:$0xff]  ;;  %v60_v6 = vld [vmem:[#allocation5 + $0x20] sm:$0xff]  ;;  %s814_s6 = sshll.u32 %s1240_s1, 4  ;;  %s815_s6 = int_to_ptr.vmem [resolvable:$true] %s814_s6 }
  0x28   :  { %v1079_v5 = vpack.c.bf16 %v59_v4, %v58_v2  ;;  %v61_v7 = vld [vmem:[#allocation5 + $0x28] sm:$0xff]  ;;  %v40_v9 = vld [vmem:[#allocation2] sm:$0xff]  ;;  %v62_v11 = vld [vmem:[#allocation5 + $0x30] sm:$0xff]  ;;  %s1207_s7 = scalar_lea.vmem %s815_s6, 5120  ;;  %p1212_p3 = scmp.lt.s32.totalorder %s815_s6, %s815_s6 }
  0x29   :  { %1076 = vmatprep.subr.bf16.mxu0 %v1075_v3  ;;  %1107 = vmatprep.subr.bf16.mxu1 %v1075_v3  ;;  %v1083_v8 = vpack.c.bf16 %v61_v7, %v60_v6  ;;  %v48_v10 = vld [vmem:[#allocation2 + $0x40] sm:$0xff]  ;;  %v63_v12 = vld [vmem:[#allocation5 + $0x38] sm:$0xff]  ;;  %v65_v15 = vld [vmem:[#allocation5 + $0x48] sm:$0xff]  ;;  %p1208_p2 = scmp.ne.s32.totalorder %s815_s6, %s1207_s7  ;;  %p1213_p4 = scmp.lt.s32.totalorder %s1207_s7, %s1207_s7 }
  0x2a   :  { %1078 = vmatpush3.bf16.msra.mxu0 %v1075_v3  ;;  %1115 = vmatpush3.bf16.msra.mxu1 %v1075_v3  ;;  %v1087_v13 = vpack.c.bf16 %v63_v12, %v62_v11  ;;  %v64_v14 = vld [vmem:[#allocation5 + $0x40] sm:$0xff]  ;;  %v66_v17 = vld [vmem:[#allocation5 + $0x50] sm:$0xff]  ;;  %v67_v18 = vld [vmem:[#allocation5 + $0x58] sm:$0xff] }
  0x2b   :  { %1080 = vmatprep.subr.bf16.mxu0 %v1079_v5  ;;  %1108 = vmatprep.subr.bf16.mxu1 %v1079_v5  ;;  %v1091_v16 = vpack.c.bf16 %v65_v15, %v64_v14  ;;  %v1095_v19 = vpack.c.bf16 %v67_v18, %v66_v17  ;;  %v68_v20 = vld [vmem:[#allocation5 + $0x60] sm:$0xff]  ;;  %v69_v21 = vld [vmem:[#allocation5 + $0x68] sm:$0xff]  ;;  %v70_v23 = vld [vmem:[#allocation5 + $0x70] sm:$0xff]  ;;  %p1214_p5 = por %p1213_p4, %p1212_p3 }
  0x2c   :  { %1051 = vmatprep.mubr.f32.mxu0 %v40_v9  ;;  %1063 = vmatprep.mubr.f32.mxu1 %v48_v10  ;;  %v1099_v22 = vpack.c.bf16 %v69_v21, %v68_v20  ;;  %v71_v24 = vld [vmem:[#allocation5 + $0x78] sm:$0xff]  ;;  %v41_v26 = vld [vmem:[#allocation2 + $0x8] sm:$0xff]  ;;  %v42_v28 = vld [vmem:[#allocation2 + $0x10] sm:$0xff] }
  0x2d   :  { %v1103_v25 = vpack.c.bf16 %v71_v24, %v70_v23  ;;  %v49_v27 = vld [vmem:[#allocation2 + $0x48] sm:$0xff]  ;;  %v50_v29 = vld [vmem:[#allocation2 + $0x50] sm:$0xff]  ;;  %v43_v30 = vld [vmem:[#allocation2 + $0x18] sm:$0xff]  ;;  %p1215_p6 = pnand %p1214_p5, %p1208_p2 }
  0x2e   :  { %1082 = vmatpush3.bf16.msra.mxu0 %v1079_v5  ;;  %1116 = vmatpush3.bf16.msra.mxu1 %v1079_v5  ;;  %v51_v31 = vld [vmem:[#allocation2 + $0x58] sm:$0xff]  ;;  %v44_v32 = vld [vmem:[#allocation2 + $0x20] sm:$0xff]  ;;  %v45_v34 = vld [vmem:[#allocation2 + $0x28] sm:$0xff] }
  0x2f   :  { %1084 = vmatprep.subr.bf16.mxu0 %v1083_v8  ;;  %1109 = vmatprep.subr.bf16.mxu1 %v1083_v8  ;;  %v52_v33 = vld [vmem:[#allocation2 + $0x60] sm:$0xff]  ;;  %v53_v35 = vld [vmem:[#allocation2 + $0x68] sm:$0xff]  ;;  %v46_v36 = vld [vmem:[#allocation2 + $0x30] sm:$0xff] }
  0x30   :  { %v54_v37 = vld [vmem:[#allocation2 + $0x70] sm:$0xff]  ;;  %v47_v38 = vld [vmem:[#allocation2 + $0x38] sm:$0xff] }
  0x31   :  { %v55_v39 = vld [vmem:[#allocation2 + $0x78] sm:$0xff] }
  0x32   :  { %1086 = vmatpush3.bf16.msra.mxu0 %v1083_v8  ;;  %1117 = vmatpush3.bf16.msra.mxu1 %v1083_v8 }
  0x33   :  { %1088 = vmatprep.subr.bf16.mxu0 %v1087_v13  ;;  %1110 = vmatprep.subr.bf16.mxu1 %v1087_v13 }
  0x36   :  { %1090 = vmatpush3.bf16.msra.mxu0 %v1087_v13  ;;  %1118 = vmatpush3.bf16.msra.mxu1 %v1087_v13 }
  0x37   :  { %1092 = vmatprep.subr.bf16.mxu0 %v1091_v16  ;;  %1111 = vmatprep.subr.bf16.mxu1 %v1091_v16 }
  0x3a   :  { %1094 = vmatpush3.bf16.msra.mxu0 %v1091_v16  ;;  %1119 = vmatpush3.bf16.msra.mxu1 %v1091_v16 }
  0x3b   :  { %1096 = vmatprep.subr.bf16.mxu0 %v1095_v19  ;;  %1112 = vmatprep.subr.bf16.mxu1 %v1095_v19 }
  0x3e   :  { %1098 = vmatpush3.bf16.msra.mxu0 %v1095_v19  ;;  %1120 = vmatpush3.bf16.msra.mxu1 %v1095_v19 }
  0x3f   :  { %1100 = vmatprep.subr.bf16.mxu0 %v1099_v22  ;;  %1113 = vmatprep.subr.bf16.mxu1 %v1099_v22 }
  0x42   :  { %1102 = vmatpush3.bf16.msra.mxu0 %v1099_v22  ;;  %1121 = vmatpush3.bf16.msra.mxu1 %v1099_v22 }
  0x43   :  { %1104 = vmatprep.subr.bf16.mxu0 %v1103_v25  ;;  %1114 = vmatprep.subr.bf16.mxu1 %v1103_v25 }
  0x46   :  { %1106 = vmatpush3.bf16.msra.mxu0 %v1103_v25  ;;  %1122 = vmatpush3.bf16.msra.mxu1 %v1103_v25 }
  0x49   :  { %1052 = vmatmul.mubr.f32.vlgmr.msra.gmra.mrb[0].mxu0 %v41_v26  ;;  %1064 = vmatmul.mubr.f32.vlgmr.msra.gmra.mrb[0].mxu1 %v49_v27 }
  0x4a   :  { %1054 = vmatprep.mubr.f32.mxu0 %v42_v28  ;;  %1066 = vmatprep.mubr.f32.mxu1 %v50_v29 }
  0x4d   :  { %1055 = vmatmul.mubr.f32.gmra.mrb[2].mxu0 %v43_v30  ;;  %1067 = vmatmul.mubr.f32.gmra.mrb[2].mxu1 %v51_v31 }
  0x4e   :  { %1057 = vmatprep.mubr.f32.mxu0 %v44_v32  ;;  %1069 = vmatprep.mubr.f32.mxu1 %v52_v33 }
  0x51   :  { %1058 = vmatmul.mubr.f32.gmra.mrb[4].mxu0 %v45_v34  ;;  %1070 = vmatmul.mubr.f32.gmra.mrb[4].mxu1 %v53_v35 }
  0x52   :  { %1060 = vmatprep.mubr.f32.mxu0 %v46_v36  ;;  %1072 = vmatprep.mubr.f32.mxu1 %v54_v37 }
  0x55   :  { %1061 = vmatmul.mubr.f32.gmra.mrb[6].mxu0 %v47_v38  ;;  %1073 = vmatmul.mubr.f32.gmra.mrb[6].mxu1 %v55_v39 }
 0x11c   :  { %v1053_v40 = vpop.f32.mrb[0].mxu0  ;;  %v1065_v41 = vpop.f32.mrb[0].mxu1 }
 0x11d   :  { %vm218_vm0 = vcmp.eq.f32.partialorder %v1053_v40, 0.0  ;;  %vm250_vm1 = vcmp.lt.f32.partialorder %v1053_v40, 0.0  ;;  %v282_v42 = vand.u32 2147483647, %v1053_v40  ;;  %vm226_vm2 = vcmp.eq.f32.partialorder %v1065_v41, 0.0  ;;  %v138_v43 = vpop.f32.mrb[1].mxu0 }
 0x11e   :  { %v234_v45 = vsel %vm218_vm0, 1.0, %v1239_v44  ;;  %v266_v46 = vsel %vm250_vm1, 1.0, %v1239_v44  ;;  %v242_v47 = vsel %vm226_vm2, 1.0, %v1239_v44  ;;  %vm258_vm3 = vcmp.lt.f32.partialorder %v1065_v41, 0.0  ;;  %v178_v48 = vpop.f32.mrb[1].mxu1 }
 0x11f   :  { %v298_v49 = vadd.f32 %v282_v42, %v234_v45  ;;  %v956_v50 = vpack.c.bf16 %v266_v46, %v266_v46  ;;  %v972_v51 = vpack.c.bf16 %v234_v45, %v234_v45  ;;  %v274_v52 = vsel %vm258_vm3, 1.0, %v1239_v44 }
 0x120   :  { %v290_v53 = vand.u32 2147483647, %v1065_v41  ;;  %v964_v54 = vpack.c.bf16 %v274_v52, %v274_v52  ;;  %v980_v55 = vpack.c.bf16 %v242_v47, %v242_v47  ;;  %vm217_vm4 = vcmp.eq.f32.partialorder %v138_v43, 0.0  ;;  %v1056_v56 = vpop.f32.mrb[2].mxu0  ;;  %v1286_v57 = vpop.f32.mrb[2].mxu1 }
 0x121   :  { %1131 = vlog2.f32 %v298_v49  ;;  %714 = vst [vmem:[#allocation7 + $0x20] sm:$0xf] %v956_v50  ;;  %794 = vst [vmem:[#allocation7 + $0x24] sm:$0xf] %v972_v51  ;;  %v233_v58 = vsel %vm217_vm4, 1.0, %v1239_v44  ;;  %vm249_vm5 = vcmp.lt.f32.partialorder %v138_v43, 0.0 }
 0x122   :  { %v281_v59 = vand.u32 2147483647, %v138_v43  ;;  %v1289_v60 = vpop.f32.mrb[3].mxu0  ;;  %v1291_v61 = vpop.f32.mrb[3].mxu1  ;;  %v306_v62 = vadd.f32 %v290_v53, %v242_v47  ;;  %722 = vst [vmem:[#allocation7 + $0xc0] sm:$0xf] %v964_v54  ;;  %v971_v0 = vpack.c.bf16 %v233_v58, %v233_v58 }
 0x123   :  { %802 = vst [vmem:[#allocation7 + $0xc4] sm:$0xf] %v980_v55  ;;  %v265_v63 = vsel %vm249_vm5, 1.0, %v1239_v44  ;;  %vm225_vm6 = vcmp.eq.f32.partialorder %v178_v48, 0.0  ;;  %vm257_vm7 = vcmp.lt.f32.partialorder %v178_v48, 0.0  ;;  %vm220_vm8 = vcmp.eq.f32.partialorder %v1056_v56, 0.0 }
 0x124   :  { %v297_v1 = vadd.f32 %v281_v59, %v233_v58  ;;  %v955_v2 = vpack.c.bf16 %v265_v63, %v265_v63  ;;  %v241_v3 = vsel %vm225_vm6, 1.0, %v1239_v44  ;;  %1133 = vlog2.f32 %v306_v62  ;;  %793 = vst [vmem:[#allocation7 + $0x10] sm:$0xf] %v971_v0  ;;  %v1296_v7 = vpop.f32.mrb[4].mxu0  ;;  %v1298_v8 = vpop.f32.mrb[4].mxu1 }
 0x125   :  { %v273_v4 = vsel %vm257_vm7, 1.0, %v1239_v44  ;;  %v289_v5 = vand.u32 2147483647, %v178_v48  ;;  %v979_v6 = vpack.c.bf16 %v241_v3, %v241_v3  ;;  %vm252_vm9 = vcmp.lt.f32.partialorder %v1056_v56, 0.0  ;;  %v1300_v10 = vpop.f32.mrb[5].mxu0  ;;  %v1302_v11 = vpop.f32.mrb[5].mxu1 }
 0x126   :  { %1135 = vlog2.f32 %v297_v1  ;;  %713 = vst [vmem:[#allocation7 + $0xc] sm:$0xf] %v955_v2  ;;  %v963_v9 = vpack.c.bf16 %v273_v4, %v273_v4  ;;  %v236_v13 = vsel %vm220_vm8, 1.0, %v1239_v44  ;;  %v268_v14 = vsel %vm252_vm9, 1.0, %v1239_v44 }
 0x127   :  { %v305_v12 = vadd.f32 %v289_v5, %v241_v3  ;;  %801 = vst [vmem:[#allocation7 + $0xb0] sm:$0xf] %v979_v6  ;;  %v284_v15 = vand.u32 2147483647, %v1056_v56  ;;  %v958_v16 = vpack.c.bf16 %v268_v14, %v268_v14  ;;  %v974_v17 = vpack.c.bf16 %v236_v13, %v236_v13 }
 0x128   :  { %721 = vst [vmem:[#allocation7 + $0xac] sm:$0xf] %v963_v9  ;;  %vm228_vm10 = vcmp.eq.f32.partialorder %v1286_v57, 0.0  ;;  %vm260_vm11 = vcmp.lt.f32.partialorder %v1286_v57, 0.0  ;;  %v1310_v21 = vpop.f32.mrb[6].mxu0  ;;  %v1312_v22 = vpop.f32.mrb[6].mxu1 }
 0x129   :  { %1137 = vlog2.f32 %v305_v12  ;;  %v300_v18 = vadd.f32 %v284_v15, %v236_v13  ;;  %v244_v19 = vsel %vm228_vm10, 1.0, %v1239_v44  ;;  %v276_v20 = vsel %vm260_vm11, 1.0, %v1239_v44  ;;  %716 = vst [vmem:[#allocation7 + $0x48] sm:$0xf] %v958_v16  ;;  %796 = vst [vmem:[#allocation7 + $0x4c] sm:$0xf] %v974_v17 }
 0x12a   :  { %v292_v23 = vand.u32 2147483647, %v1286_v57  ;;  %v966_v24 = vpack.c.bf16 %v276_v20, %v276_v20  ;;  %v982_v25 = vpack.c.bf16 %v244_v19, %v244_v19  ;;  %vm219_vm12 = vcmp.eq.f32.partialorder %v1289_v60, 0.0  ;;  %v1316_v26 = vpop.f32.mrb[7].mxu0  ;;  %v1318_v27 = vpop.f32.mrb[7].mxu1 }
 0x12b   :  { %1139 = vlog2.f32 %v300_v18  ;;  %v235_v28 = vsel %vm219_vm12, 1.0, %v1239_v44  ;;  %vm251_vm13 = vcmp.lt.f32.partialorder %v1289_v60, 0.0  ;;  %v283_v29 = vand.u32 2147483647, %v1289_v60  ;;  %v1132_v30 = vpop.eup %1131 }
 0x12c   :  { %v308_v31 = vadd.f32 %v292_v23, %v244_v19  ;;  %724 = vst [vmem:[#allocation7 + $0xe8] sm:$0xf] %v966_v24  ;;  %804 = vst [vmem:[#allocation7 + $0xec] sm:$0xf] %v982_v25  ;;  %v267_v32 = vsel %vm251_vm13, 1.0, %v1239_v44  ;;  %v973_v33 = vpack.c.bf16 %v235_v28, %v235_v28  ;;  %vm227_vm14 = vcmp.eq.f32.partialorder %v1291_v61, 0.0 }
 0x12d   :  { %v316_v34 = vmul.f32 0.6931472, %v1132_v30  ;;  %v299_v35 = vadd.f32 %v283_v29, %v235_v28  ;;  %v957_v36 = vpack.c.bf16 %v267_v32, %v267_v32  ;;  %v243_v37 = vsel %vm227_vm14, 1.0, %v1239_v44 }
 0x12e   :  { %1141 = vlog2.f32 %v308_v31  ;;  %795 = vst [vmem:[#allocation7 + $0x38] sm:$0xf] %v973_v33  ;;  %vm259_vm15 = vcmp.lt.f32.partialorder %v1291_v61, 0.0  ;;  %v291_v38 = vand.u32 2147483647, %v1291_v61  ;;  %v981_v39 = vpack.c.bf16 %v243_v37, %v243_v37  ;;  %v1134_v40 = vpop.eup %1133 }
 0x12f   :  { %v908_v41 = vpack.c.bf16 %v316_v34, %v316_v34  ;;  %1143 = vlog2.f32 %v299_v35  ;;  %715 = vst [vmem:[#allocation7 + $0x34] sm:$0xf] %v957_v36  ;;  %v275_v42 = vsel %vm259_vm15, 1.0, %v1239_v44  ;;  %vm222_vm0 = vcmp.eq.f32.partialorder %v1296_v7, 0.0 }
 0x130   :  { %v1136_v43 = vpop.eup %1135  ;;  %v332_v45 = vmul.f32 0.6931472, %v1134_v40  ;;  %v307_v46 = vadd.f32 %v291_v38, %v243_v37  ;;  %v965_v47 = vpack.c.bf16 %v275_v42, %v275_v42  ;;  %803 = vst [vmem:[#allocation7 + $0xd8] sm:$0xf] %v981_v39  ;;  %v238_v48 = vsel %vm222_vm0, 1.0, %v1239_v44 }
 0x131   :  { %490 = vst [vmem:[#allocation7 + $0x14] sm:$0xf] %v908_v41  ;;  %v314_v49 = vmul.f32 0.6931472, %v1136_v43  ;;  %vm254_vm1 = vcmp.lt.f32.partialorder %v1296_v7, 0.0  ;;  %v976_v51 = vpack.c.bf16 %v238_v48, %v238_v48  ;;  %vm230_vm2 = vcmp.eq.f32.partialorder %v1298_v8, 0.0 }
 0x132   :  { %v286_v50 = vand.u32 2147483647, %v1296_v7  ;;  %v916_v52 = vpack.c.bf16 %v332_v45, %v332_v45  ;;  %1145 = vlog2.f32 %v307_v46  ;;  %723 = vst [vmem:[#allocation7 + $0xd4] sm:$0xf] %v965_v47  ;;  %v270_v53 = vsel %vm254_vm1, 1.0, %v1239_v44 }
 0x133   :  { %v1138_v54 = vpop.eup %1137  ;;  %v345_v55 = vpack.c.bf16 %v316_v34, %v314_v49  ;;  %v907_v56 = vpack.c.bf16 %v314_v49, %v314_v49  ;;  %v960_v58 = vpack.c.bf16 %v270_v53, %v270_v53  ;;  %798 = vst [vmem:[#allocation7 + $0x74] sm:$0xf] %v976_v51  ;;  %v246_v60 = vsel %vm230_vm2, 1.0, %v1239_v44 }
 0x134   :  { %v302_v57 = vadd.f32 %v286_v50, %v238_v48  ;;  %498 = vst [vmem:[#allocation7 + $0xb4] sm:$0xf] %v916_v52  ;;  %v330_v59 = vmul.f32 0.6931472, %v1138_v54  ;;  %vm262_vm3 = vcmp.lt.f32.partialorder %v1298_v8, 0.0  ;;  %v984_v12 = vpack.c.bf16 %v246_v60, %v246_v60 }
 0x135   :  { %v294_v61 = vand.u32 2147483647, %v1298_v8  ;;  %v1140_v62 = vpop.eup %1139  ;;  %v353_v63 = vunpack.c.l.bf16 %v345_v55  ;;  %v354_v0 = vunpack.c.h.bf16 %v345_v55  ;;  %489 = vst [vmem:[#allocation7] sm:$0xf] %v907_v56  ;;  %718 = vst [vmem:[#allocation7 + $0x70] sm:$0xf] %v960_v58 }
 0x136   :  { %1147 = vlog2.f32 %v302_v57  ;;  %v278_v1 = vsel %vm262_vm3, 1.0, %v1239_v44  ;;  %v349_v2 = vpack.c.bf16 %v332_v45, %v330_v59  ;;  %v915_v3 = vpack.c.bf16 %v330_v59, %v330_v59  ;;  %806 = vst [vmem:[#allocation7 + $0x114] sm:$0xf] %v984_v12 }
 0x137   :  { %v320_v4 = vmul.f32 0.6931472, %v1140_v62  ;;  %v310_v5 = vadd.f32 %v294_v61, %v246_v60  ;;  %v369_v6 = vsub.f32 %v314_v49, %v353_v63  ;;  %v370_v7 = vsub.f32 %v316_v34, %v354_v0 }
 0x138   :  { %v968_v9 = vpack.c.bf16 %v278_v1, %v278_v1  ;;  %v1142_v13 = vpop.eup %1141  ;;  %v361_v14 = vunpack.c.l.bf16 %v349_v2  ;;  %v362_v15 = vunpack.c.h.bf16 %v349_v2  ;;  %497 = vst [vmem:[#allocation7 + $0xa0] sm:$0xf] %v915_v3  ;;  %vm221_vm4 = vcmp.eq.f32.partialorder %v1300_v10, 0.0 }
 0x139   :  { %v910_v8 = vpack.c.bf16 %v320_v4, %v320_v4  ;;  %1149 = vlog2.f32 %v310_v5  ;;  %v1144_v16 = vpop.eup %1143  ;;  %v385_v17 = vpack.c.bf16 %v370_v7, %v369_v6  ;;  %v923_v18 = vpack.c.bf16 %v369_v6, %v369_v6 }
 0x13a   :  { %v924_v19 = vpack.c.bf16 %v370_v7, %v370_v7  ;;  %v336_v20 = vmul.f32 0.6931472, %v1142_v13  ;;  %726 = vst [vmem:[#allocation7 + $0x110] sm:$0xf] %v968_v9  ;;  %v377_v23 = vsub.f32 %v330_v59, %v361_v14  ;;  %v378_v24 = vsub.f32 %v332_v45, %v362_v15 }
 0x13b   :  { %492 = vst [vmem:[#allocation7 + $0x3c] sm:$0xf] %v910_v8  ;;  %v318_v25 = vmul.f32 0.6931472, %v1144_v16  ;;  %v393_v28 = vunpack.c.l.bf16 %v385_v17  ;;  %v394_v29 = vunpack.c.h.bf16 %v385_v17  ;;  %561 = vst [vmem:[#allocation7 + $0x4] sm:$0xf] %v923_v18 }
 0x13c   :  { %562 = vst [vmem:[#allocation7 + $0x18] sm:$0xf] %v924_v19  ;;  %v918_v30 = vpack.c.bf16 %v336_v20, %v336_v20  ;;  %v1341_v31 = vsel %vm221_vm4, 1.0, %v1239_v44  ;;  %v1146_v32 = vpop.eup %1145  ;;  %v389_v33 = vpack.c.bf16 %v378_v24, %v377_v23  ;;  %v931_v34 = vpack.c.bf16 %v377_v23, %v377_v23 }
 0x13d   :  { %v932_v35 = vpack.c.bf16 %v378_v24, %v378_v24  ;;  %v346_v36 = vpack.c.bf16 %v320_v4, %v318_v25  ;;  %v409_v37 = vsub.f32 %v369_v6, %v393_v28  ;;  %v410_v38 = vsub.f32 %v370_v7, %v394_v29 }
 0x13e   :  { %500 = vst [vmem:[#allocation7 + $0xdc] sm:$0xf] %v918_v30  ;;  %v909_v39 = vpack.c.bf16 %v318_v25, %v318_v25  ;;  %v334_v40 = vmul.f32 0.6931472, %v1146_v32  ;;  %v401_v41 = vunpack.c.l.bf16 %v389_v33  ;;  %v402_v42 = vunpack.c.h.bf16 %v389_v33  ;;  %569 = vst [vmem:[#allocation7 + $0xa4] sm:$0xf] %v931_v34 }
 0x13f   :  { %570 = vst [vmem:[#allocation7 + $0xb8] sm:$0xf] %v932_v35  ;;  %v355_v43 = vunpack.c.l.bf16 %v346_v36  ;;  %v356_v45 = vunpack.c.h.bf16 %v346_v36  ;;  %v939_v47 = vpack.c.bf16 %v409_v37, %v409_v37  ;;  %v940_v48 = vpack.c.bf16 %v410_v38, %v410_v38 }
 0x140   :  { %v1148_v46 = vpop.eup %1147  ;;  %491 = vst [vmem:[#allocation7 + $0x28] sm:$0xf] %v909_v39  ;;  %v350_v49 = vpack.c.bf16 %v336_v20, %v334_v40  ;;  %v917_v50 = vpack.c.bf16 %v334_v40, %v334_v40  ;;  %v417_v51 = vsub.f32 %v377_v23, %v401_v41  ;;  %v418_v52 = vsub.f32 %v378_v24, %v402_v42 }
 0x141   :  { %v371_v53 = vsub.f32 %v318_v25, %v355_v43  ;;  %v372_v54 = vsub.f32 %v320_v4, %v356_v45  ;;  %633 = vst [vmem:[#allocation7 + $0x8] sm:$0xf] %v939_v47  ;;  %634 = vst [vmem:[#allocation7 + $0x1c] sm:$0xf] %v940_v48  ;;  %v1343_v57 = vmul.f32 0.6931472, %v1148_v46 }
 0x142   :  { %v363_v55 = vunpack.c.l.bf16 %v350_v49  ;;  %v364_v56 = vunpack.c.h.bf16 %v350_v49  ;;  %499 = vst [vmem:[#allocation7 + $0xc8] sm:$0xf] %v917_v50  ;;  %vm253_vm5 = vcmp.lt.f32.partialorder %v1300_v10, 0.0  ;;  %v947_v59 = vpack.c.bf16 %v417_v51, %v417_v51 }
 0x143   :  { %v1150_v58 = vpop.eup %1149  ;;  %v948_v60 = vpack.c.bf16 %v418_v52, %v418_v52  ;;  %v386_v61 = vpack.c.bf16 %v372_v54, %v371_v53  ;;  %v925_v62 = vpack.c.bf16 %v371_v53, %v371_v53  ;;  %v926_v63 = vpack.c.bf16 %v372_v54, %v372_v54 }
 0x144   :  { %v379_v0 = vsub.f32 %v334_v40, %v363_v55  ;;  %v380_v1 = vsub.f32 %v336_v20, %v364_v56  ;;  %v912_v2 = vpack.c.bf16 %v1343_v57, %v1343_v57  ;;  %641 = vst [vmem:[#allocation7 + $0xa8] sm:$0xf] %v947_v59  ;;  %v1348_v5 = vmul.f32 0.6931472, %v1150_v58 }
 0x145   :  { %642 = vst [vmem:[#allocation7 + $0xbc] sm:$0xf] %v948_v60  ;;  %v395_v3 = vunpack.c.l.bf16 %v386_v61  ;;  %v396_v4 = vunpack.c.h.bf16 %v386_v61  ;;  %563 = vst [vmem:[#allocation7 + $0x2c] sm:$0xf] %v925_v62  ;;  %v269_v6 = vsel %vm253_vm5, 1.0, %v1239_v44  ;;  %v975_v20 = vpack.c.bf16 %v1341_v31, %v1341_v31 }
 0x146   :  { %564 = vst [vmem:[#allocation7 + $0x40] sm:$0xf] %v926_v63  ;;  %v390_v7 = vpack.c.bf16 %v380_v1, %v379_v0  ;;  %v933_v9 = vpack.c.bf16 %v379_v0, %v379_v0  ;;  %v934_v12 = vpack.c.bf16 %v380_v1, %v380_v1  ;;  %494 = vst [vmem:[#allocation7 + $0x64] sm:$0xf] %v912_v2  ;;  %v285_v13 = vand.u32 2147483647, %v1300_v10 }
 0x147   :  { %v411_v14 = vsub.f32 %v371_v53, %v395_v3  ;;  %v412_v15 = vsub.f32 %v372_v54, %v396_v4  ;;  %v920_v8 = vpack.c.bf16 %v1348_v5, %v1348_v5  ;;  %v959_v16 = vpack.c.bf16 %v269_v6, %v269_v6  ;;  %797 = vst [vmem:[#allocation7 + $0x60] sm:$0xf] %v975_v20 }
 0x148   :  { %v403_v17 = vunpack.c.l.bf16 %v390_v7  ;;  %v404_v18 = vunpack.c.h.bf16 %v390_v7  ;;  %571 = vst [vmem:[#allocation7 + $0xcc] sm:$0xf] %v933_v9  ;;  %572 = vst [vmem:[#allocation7 + $0xe0] sm:$0xf] %v934_v12  ;;  %v301_v19 = vadd.f32 %v285_v13, %v1341_v31  ;;  %vm229_vm6 = vcmp.eq.f32.partialorder %v1302_v11, 0.0 }
 0x149   :  { %v941_v23 = vpack.c.bf16 %v411_v14, %v411_v14  ;;  %v942_v24 = vpack.c.bf16 %v412_v15, %v412_v15  ;;  %502 = vst [vmem:[#allocation7 + $0x104] sm:$0xf] %v920_v8  ;;  %717 = vst [vmem:[#allocation7 + $0x5c] sm:$0xf] %v959_v16  ;;  %vm261_vm7 = vcmp.lt.f32.partialorder %v1302_v11, 0.0  ;;  %v245_v28 = vsel %vm229_vm6, 1.0, %v1239_v44 }
 0x14a   :  { %v419_v10 = vsub.f32 %v379_v0, %v403_v17  ;;  %v420_v25 = vsub.f32 %v380_v1, %v404_v18  ;;  %1151 = vlog2.f32 %v301_v19  ;;  %v277_v29 = vsel %vm261_vm7, 1.0, %v1239_v44 }
 0x14b   :  { %635 = vst [vmem:[#allocation7 + $0x30] sm:$0xf] %v941_v23  ;;  %636 = vst [vmem:[#allocation7 + $0x44] sm:$0xf] %v942_v24  ;;  %v293_v30 = vand.u32 2147483647, %v1302_v11  ;;  %v983_v31 = vpack.c.bf16 %v245_v28, %v245_v28  ;;  %v967_v34 = vpack.c.bf16 %v277_v29, %v277_v29 }
 0x14c   :  { %vm224_vm8 = vcmp.eq.f32.partialorder %v1310_v21, 0.0  ;;  %v949_v32 = vpack.c.bf16 %v419_v10, %v419_v10  ;;  %v950_v33 = vpack.c.bf16 %v420_v25, %v420_v25  ;;  %vm256_vm9 = vcmp.lt.f32.partialorder %v1310_v21, 0.0 }
 0x14d   :  { %v240_v35 = vsel %vm224_vm8, 1.0, %v1239_v44  ;;  %v309_v36 = vadd.f32 %v293_v30, %v245_v28  ;;  %805 = vst [vmem:[#allocation7 + $0x100] sm:$0xf] %v983_v31  ;;  %v288_v37 = vand.u32 2147483647, %v1310_v21  ;;  %v272_v11 = vsel %vm256_vm9, 1.0, %v1239_v44 }
 0x14e   :  { %v978_v38 = vpack.c.bf16 %v240_v35, %v240_v35  ;;  %643 = vst [vmem:[#allocation7 + $0xd0] sm:$0xf] %v949_v32  ;;  %644 = vst [vmem:[#allocation7 + $0xe4] sm:$0xf] %v950_v33  ;;  %vm232_vm10 = vcmp.eq.f32.partialorder %v1312_v22, 0.0  ;;  %vm264_vm11 = vcmp.lt.f32.partialorder %v1312_v22, 0.0  ;;  %v962_v41 = vpack.c.bf16 %v272_v11, %v272_v11 }
 0x14f   :  { %725 = vst [vmem:[#allocation7 + $0xfc] sm:$0xf] %v967_v34  ;;  %v296_v39 = vand.u32 2147483647, %v1312_v22  ;;  %1153 = vlog2.f32 %v309_v36  ;;  %v304_v40 = vadd.f32 %v288_v37, %v240_v35  ;;  %v248_v42 = vsel %vm232_vm10, 1.0, %v1239_v44 }
 0x150   :  { %800 = vst [vmem:[#allocation7 + $0x9c] sm:$0xf] %v978_v38  ;;  %v280_v21 = vsel %vm264_vm11, 1.0, %v1239_v44  ;;  %v986_v45 = vpack.c.bf16 %v248_v42, %v248_v42  ;;  %vm223_vm12 = vcmp.eq.f32.partialorder %v1316_v26, 0.0  ;;  %720 = vst [vmem:[#allocation7 + $0x98] sm:$0xf] %v962_v41 }
 0x151   :  { %v312_v43 = vadd.f32 %v296_v39, %v248_v42  ;;  %1155 = vlog2.f32 %v304_v40  ;;  %v970_v46 = vpack.c.bf16 %v280_v21, %v280_v21  ;;  %v239_v47 = vsel %vm223_vm12, 1.0, %v1239_v44 }
 0x152   :  { %vm255_vm13 = vcmp.lt.f32.partialorder %v1316_v26, 0.0  ;;  %808 = vst [vmem:[#allocation7 + $0x13c] sm:$0xf] %v986_v45  ;;  %v287_v48 = vand.u32 2147483647, %v1316_v26  ;;  %v977_v49 = vpack.c.bf16 %v239_v47, %v239_v47  ;;  %vm231_vm14 = vcmp.eq.f32.partialorder %v1318_v27, 0.0 }
 0x153   :  { %1157 = vlog2.f32 %v312_v43  ;;  %v271_v22 = vsel %vm255_vm13, 1.0, %v1239_v44  ;;  %728 = vst [vmem:[#allocation7 + $0x138] sm:$0xf] %v970_v46  ;;  %vm263_vm15 = vcmp.lt.f32.partialorder %v1318_v27, 0.0  ;;  %v295_v51 = vand.u32 2147483647, %v1318_v27 }
 0x154   :  { %v961_v50 = vpack.c.bf16 %v271_v22, %v271_v22  ;;  %v1152_v52 = vpop.eup %1151  ;;  %v303_v53 = vadd.f32 %v287_v48, %v239_v47  ;;  %799 = vst [vmem:[#allocation7 + $0x88] sm:$0xf] %v977_v49  ;;  %v247_v54 = vsel %vm231_vm14, 1.0, %v1239_v44  ;;  %v279_v55 = vsel %vm263_vm15, 1.0, %v1239_v44 }
 0x155   :  { %v322_v56 = vmul.f32 0.6931472, %v1152_v52  ;;  %v311_v58 = vadd.f32 %v295_v51, %v247_v54  ;;  %v969_v26 = vpack.c.bf16 %v279_v55, %v279_v55  ;;  %v985_v59 = vpack.c.bf16 %v247_v54, %v247_v54 }
 0x156   :  { %719 = vst [vmem:[#allocation7 + $0x84] sm:$0xf] %v961_v50  ;;  %1159 = vlog2.f32 %v303_v53 }
 0x157   :  { %v347_v60 = vpack.c.bf16 %v1343_v57, %v322_v56  ;;  %v911_v61 = vpack.c.bf16 %v322_v56, %v322_v56  ;;  %1161 = vlog2.f32 %v311_v58  ;;  %727 = vst [vmem:[#allocation7 + $0x124] sm:$0xf] %v969_v26  ;;  %807 = vst [vmem:[#allocation7 + $0x128] sm:$0xf] %v985_v59 }
 0x159   :  { %v1154_v27 = vpop.eup %1153  ;;  %v357_v62 = vunpack.c.l.bf16 %v347_v60  ;;  %v358_v63 = vunpack.c.h.bf16 %v347_v60  ;;  %493 = vst [vmem:[#allocation7 + $0x50] sm:$0xf] %v911_v61 }
 0x15a   :  { %v338_v0 = vmul.f32 0.6931472, %v1154_v27 }
 0x15b   :  { %v1156_v1 = vpop.eup %1155  ;;  %v373_v2 = vsub.f32 %v322_v56, %v357_v62  ;;  %v374_v44 = vsub.f32 %v1343_v57, %v358_v63 }
 0x15c   :  { %v351_v4 = vpack.c.bf16 %v1348_v5, %v338_v0  ;;  %v919_v6 = vpack.c.bf16 %v338_v0, %v338_v0  ;;  %v328_v7 = vmul.f32 0.6931472, %v1156_v1 }
 0x15d   :  { %v1158_v3 = vpop.eup %1157  ;;  %v387_v9 = vpack.c.bf16 %v374_v44, %v373_v2  ;;  %v927_v12 = vpack.c.bf16 %v373_v2, %v373_v2  ;;  %v928_v13 = vpack.c.bf16 %v374_v44, %v374_v44 }
 0x15e   :  { %v344_v14 = vmul.f32 0.6931472, %v1158_v3  ;;  %v365_v15 = vunpack.c.l.bf16 %v351_v4  ;;  %v366_v8 = vunpack.c.h.bf16 %v351_v4  ;;  %501 = vst [vmem:[#allocation7 + $0xf0] sm:$0xf] %v919_v6  ;;  %v914_v16 = vpack.c.bf16 %v328_v7, %v328_v7 }
 0x15f   :  { %v397_v17 = vunpack.c.l.bf16 %v387_v9  ;;  %v398_v18 = vunpack.c.h.bf16 %v387_v9  ;;  %565 = vst [vmem:[#allocation7 + $0x54] sm:$0xf] %v927_v12  ;;  %566 = vst [vmem:[#allocation7 + $0x68] sm:$0xf] %v928_v13 }
 0x160   :  { %v922_v19 = vpack.c.bf16 %v344_v14, %v344_v14  ;;  %v1160_v20 = vpop.eup %1159  ;;  %v381_v57 = vsub.f32 %v338_v0, %v365_v15  ;;  %v382_v23 = vsub.f32 %v1348_v5, %v366_v8  ;;  %496 = vst [vmem:[#allocation7 + $0x8c] sm:$0xf] %v914_v16 }
 0x161   :  { %v1162_v24 = vpop.eup %1161  ;;  %v413_v10 = vsub.f32 %v373_v2, %v397_v17  ;;  %v414_v25 = vsub.f32 %v374_v44, %v398_v18  ;;  %v326_v28 = vmul.f32 0.6931472, %v1160_v20 }
 0x162   :  { %504 = vst [vmem:[#allocation7 + $0x12c] sm:$0xf] %v922_v19  ;;  %v391_v29 = vpack.c.bf16 %v382_v23, %v381_v57  ;;  %v935_v30 = vpack.c.bf16 %v381_v57, %v381_v57  ;;  %v936_v31 = vpack.c.bf16 %v382_v23, %v382_v23  ;;  %v342_v32 = vmul.f32 0.6931472, %v1162_v24 }
 0x163   :  { %v943_v33 = vpack.c.bf16 %v413_v10, %v413_v10  ;;  %v944_v34 = vpack.c.bf16 %v414_v25, %v414_v25  ;;  %v348_v35 = vpack.c.bf16 %v328_v7, %v326_v28  ;;  %v913_v36 = vpack.c.bf16 %v326_v28, %v326_v28 }
 0x164   :  { %v405_v37 = vunpack.c.l.bf16 %v391_v29  ;;  %v406_v38 = vunpack.c.h.bf16 %v391_v29  ;;  %573 = vst [vmem:[#allocation7 + $0xf4] sm:$0xf] %v935_v30  ;;  %574 = vst [vmem:[#allocation7 + $0x108] sm:$0xf] %v936_v31  ;;  %v352_v11 = vpack.c.bf16 %v344_v14, %v342_v32  ;;  %v921_v5 = vpack.c.bf16 %v342_v32, %v342_v32 }
 0x165   :  { %637 = vst [vmem:[#allocation7 + $0x58] sm:$0xf] %v943_v33  ;;  %638 = vst [vmem:[#allocation7 + $0x6c] sm:$0xf] %v944_v34  ;;  %v359_v39 = vunpack.c.l.bf16 %v348_v35  ;;  %v360_v40 = vunpack.c.h.bf16 %v348_v35 }
 0x166   :  { %495 = vst [vmem:[#allocation7 + $0x78] sm:$0xf] %v913_v36  ;;  %v421_v41 = vsub.f32 %v381_v57, %v405_v37  ;;  %v422_v42 = vsub.f32 %v382_v23, %v406_v38  ;;  %v367_v21 = vunpack.c.l.bf16 %v352_v11  ;;  %v368_v43 = vunpack.c.h.bf16 %v352_v11  ;;  %503 = vst [vmem:[#allocation7 + $0x118] sm:$0xf] %v921_v5 }
 0x167   :  { %v375_v45 = vsub.f32 %v326_v28, %v359_v39  ;;  %v376_v46 = vsub.f32 %v328_v7, %v360_v40 }
 0x168   :  { %v951_v47 = vpack.c.bf16 %v421_v41, %v421_v41  ;;  %v952_v22 = vpack.c.bf16 %v422_v42, %v422_v42  ;;  %v383_v48 = vsub.f32 %v342_v32, %v367_v21  ;;  %v384_v49 = vsub.f32 %v344_v14, %v368_v43 }
 0x169   :  { %v388_v50 = vpack.c.bf16 %v376_v46, %v375_v45  ;;  %v929_v51 = vpack.c.bf16 %v375_v45, %v375_v45  ;;  %v930_v52 = vpack.c.bf16 %v376_v46, %v376_v46 }
 0x16a   :  { %645 = vst [vmem:[#allocation7 + $0xf8] sm:$0xf] %v951_v47  ;;  %646 = vst [vmem:[#allocation7 + $0x10c] sm:$0xf] %v952_v22  ;;  %v392_v53 = vpack.c.bf16 %v384_v49, %v383_v48  ;;  %v937_v54 = vpack.c.bf16 %v383_v48, %v383_v48  ;;  %v938_v55 = vpack.c.bf16 %v384_v49, %v384_v49 }
 0x16b   :  { %v399_v56 = vunpack.c.l.bf16 %v388_v50  ;;  %v400_v58 = vunpack.c.h.bf16 %v388_v50  ;;  %567 = vst [vmem:[#allocation7 + $0x7c] sm:$0xf] %v929_v51  ;;  %568 = vst [vmem:[#allocation7 + $0x90] sm:$0xf] %v930_v52 }
 0x16c   :  { %v407_v26 = vunpack.c.l.bf16 %v392_v53  ;;  %v408_v59 = vunpack.c.h.bf16 %v392_v53  ;;  %575 = vst [vmem:[#allocation7 + $0x11c] sm:$0xf] %v937_v54  ;;  %576 = vst [vmem:[#allocation7 + $0x130] sm:$0xf] %v938_v55 }
 0x16d   :  { %v415_v60 = vsub.f32 %v375_v45, %v399_v56  ;;  %v416_v61 = vsub.f32 %v376_v46, %v400_v58 }
 0x16e   :  { %v423_v27 = vsub.f32 %v383_v48, %v407_v26  ;;  %v424_v62 = vsub.f32 %v384_v49, %v408_v59 }
 0x16f   :  { %v945_v63 = vpack.c.bf16 %v415_v60, %v415_v60  ;;  %v946_v0 = vpack.c.bf16 %v416_v61, %v416_v61 }
 0x170   :  { %v953_v1 = vpack.c.bf16 %v423_v27, %v423_v27  ;;  %v954_v2 = vpack.c.bf16 %v424_v62, %v424_v62 }
 0x171   :  { %639 = vst [vmem:[#allocation7 + $0x80] sm:$0xf] %v945_v63  ;;  %640 = vst [vmem:[#allocation7 + $0x94] sm:$0xf] %v946_v0 }
 0x172   :  { %647 = vst [vmem:[#allocation7 + $0x120] sm:$0xf] %v953_v1  ;;  %648 = vst [vmem:[#allocation7 + $0x134] sm:$0xf] %v954_v2 }
 0x173   :  { %1218 = shalt.err (!%p1215_p6)
}
 0x174   :  { %s1219_s10 = scalar_lea.hbm %s1402_s2, 5120 }
 0x175   :  { %p1220_p7 = scmp.ne.s32.totalorder %s1402_s2, %s1219_s10  ;;  %p1223_p8 = scmp.lt.u32.totalorder %s1219_s10, %s1402_s2 }
 0x177   :  { %p1225_p9 = pnand %p1223_p8, %p1220_p7 }
 0x179   :  { %1228 = shalt.err (!%p1225_p9)
}
 0x17a   :  { %s1241_s15 = smov 320   ;;  %s1242_s16 = smov 20  }
 0x17b   :  { %820 = dma.vmem_to_hbm [thread:$0]  %s815_s6, 5120, %s1402_s2, [#allocation4], %s1241_s15, %s1241_s15, %s1242_s16  }
 0x17c   :  { %1233 = dma.done.wait [#allocation4], 5120  }
 0x17d   :  { %1234 = vsyncadd [#allocation4], 4294962176 }
 0x17e   :  { %824 = vsyncpa [#allocation3], 1 }
 0x17f   :  { %825 = vsyncpa [#allocation6], 1 }
 0x180   :  { %826 = vsyncpa [#allocation4], 1 }

</bundles_post_ra>
